<compile_context>
chip_gen: v6e
topology: v6e:2x2x1
jax: 0.10.0
libtpu: 0.0.40
codegen_flags: <defaults>
</compile_context>

<pallas_src>
import jax
import jax.numpy as jnp
from jax import lax
from jax.experimental import pallas as pl
from jax.experimental.pallas import tpu as pltpu


def _largest_div_tile(n, unit, cap):
    """Largest multiple of `unit` that divides n and is <= cap (None if none)."""
    best = None
    t = unit
    top = min(n, cap)
    while t <= top:
        if n % t == 0:
            best = t
        t += unit
    return best


# --------------------------------------------------------------------------
# Pass 1: Gram row-block accumulation + folded-softmax finalize (bf16 out).
# --------------------------------------------------------------------------
def _make_attn_kernel(C, TC):
    num_row_blocks = C // TC

    def kernel(gamma_ref, x_ref, attn_ref, acc_ref):
        k = pl.program_id(2)

        @pl.when(k == 0)
        def _init():
            acc_ref[...] = jnp.zeros_like(acc_ref)

        x = x_ref[...]                                     # (C, TN) bf16
        if num_row_blocks == 1:
            rows = x                                       # TC == C
        else:
            start = pl.multiple_of(pl.program_id(1) * TC, TC)
            rows = x_ref[pl.ds(start, TC), :]              # (TC, TN) bf16
        # rows @ x^T: contraction on the lane (spatial) axis of both operands;
        # bf16 operands, f32 accumulation on the MXU.
        acc_ref[...] += lax.dot_general(
            rows, x, (((1,), (1,)), ((), ())),
            preferred_element_type=jnp.float32)            # (TC, C) f32

        @pl.when(k == pl.num_programs(2) - 1)
        def _finalize():
            e = acc_ref[...]                               # (TC, C) f32
            # (max(E,-1) - E) then softmax's own max-subtraction == min(E,-1) - E
            logits = jnp.min(e, axis=-1, keepdims=True) - e
            p = jnp.exp(logits)
            inv = pl.reciprocal(jnp.sum(p, axis=-1, keepdims=True), approx=False)
            # Deferred normalization: 1/rowsum and gamma folded once; bf16 output
            # halves attn HBM traffic and removes the per-tile cast in pass 2.
            attn_ref[...] = (p * (gamma_ref[0] * inv)).astype(attn_ref.dtype)

    return kernel


# --------------------------------------------------------------------------
# Pass 2: out_tile = attn_folded @ x_tile + x_tile  (bf16 MXU, f32 accumulate)
# --------------------------------------------------------------------------
def _apply_kernel(attn_ref, x_ref, o_ref):
    x = x_ref[...]                                         # (C, TN) bf16
    ax = jnp.dot(attn_ref[...], x, preferred_element_type=jnp.float32)
    o_ref[...] = (ax + x.astype(jnp.float32)).astype(o_ref.dtype)


def cam_module(x_nchw, gamma, *, max_row_block=None, max_spatial_tile=2048):
    """Pallas implementation of CAM_Module.forward (NCHW in, NCHW out)."""
    B, C, H, W = x_nchw.shape
    N = H * W
    out_dtype = x_nchw.dtype
    out_isize = jnp.dtype(out_dtype).itemsize

    x = x_nchw.reshape(B, C, N)
    if x.dtype != jnp.bfloat16:
        x = x.astype(jnp.bfloat16)        # bf16 feed: full-rate MXU, half the HBM reads
    gamma = jnp.asarray(gamma, jnp.float32).reshape((1,))

    # ---- generation-aware VMEM budget (v5e/v6e: 128 MiB, v7x: 64 MiB) ----
    try:
        vmem_cap = int(getattr(pltpu.get_tpu_info(), "vmem_capacity_bytes",
                               64 * 1024 * 1024))
    except Exception:
        vmem_cap = 64 * 1024 * 1024
    budget = int(0.75 * vmem_cap)         # ~96 MiB v5e/v6e, ~48 MiB v7x

    # ---- spatial tile TN: largest lane-dense divisor of N whose pass-2
    #      double-buffered working set (attn + x + out blocks) fits the budget.
    if N % 128 == 0:
        TN = 128
        t = 128
        top = min(N, max_spatial_tile)
        while t <= top:
            if N % t == 0 and (2 * (C * C * 2) + 2 * (C * t * 2)
                               + 2 * (C * t * out_isize)) <= budget:
                TN = t
            t += 128
    else:
        # TODO(synk): pad N up to a multiple of 128 for lane-dense stores instead
        # of falling back to a full-extent (masked) spatial block.
        TN = N

    # ---- channel row-block TC: full C if the pass-1 working set fits, else the
    #      largest multiple-of-8 divisor of C that does (bounds the resident
    #      accumulator for v7x and adds a 'parallel' axis for its 2 TCs).
    def _p1_bytes(tc):
        return 2 * (C * TN * 2) + 2 * (tc * C * 2) + tc * C * 4

    TC = C
    if max_row_block is not None and C % 8 == 0:
        cand = _largest_div_tile(C, 8, max_row_block)
        if cand is not None:
            TC = cand
    if _p1_bytes(TC) > budget and C % 8 == 0:
        cand = None
        t = 8
        while t <= C:
            if C % t == 0 and _p1_bytes(t) <= budget:
                cand = t
            t += 8
        if cand is not None:
            TC = cand

    num_row_blocks = C // TC
    num_tiles = N // TN
    vmem_limit = budget

    # ---- pass 1: folded attention weights (B, C, C) in bf16 ----
    attn = pl.pallas_call(
        _make_attn_kernel(C, TC),
        out_shape=jax.ShapeDtypeStruct((B, C, C), jnp.bfloat16),
        grid=(B, num_row_blocks, num_tiles),
        in_specs=[
            pl.BlockSpec(memory_space=pltpu.MemorySpace.SMEM),        # gamma scalar
            pl.BlockSpec((None, C, TN), lambda b, c, k: (b, 0, k)),   # x spatial tile
        ],
        out_specs=pl.BlockSpec((None, TC, C), lambda b, c, k: (b, c, 0)),
        scratch_shapes=[pltpu.VMEM((TC, C), jnp.float32)],            # Gram accumulator
        compiler_params=pltpu.CompilerParams(
            dimension_semantics=("parallel", "parallel", "arbitrary"),
            vmem_limit_bytes=vmem_limit),
        cost_estimate=pl.CostEstimate(
            flops=int(2 * B * C * C * N),
            transcendentals=int(B * C * C),
            bytes_accessed=int(2 * B * C * N * num_row_blocks + 2 * B * C * C)),
    )(gamma, x)

    # ---- pass 2: apply folded attention + residual, tiled over spatial ----
    out = pl.pallas_call(
        _apply_kernel,
        out_shape=jax.ShapeDtypeStruct((B, C, N), out_dtype),
        grid=(B, num_tiles),
        in_specs=[
            pl.BlockSpec((None, C, C), lambda b, j: (b, 0, 0)),       # attn (bf16)
            pl.BlockSpec((None, C, TN), lambda b, j: (b, 0, j)),      # x spatial tile
        ],
        out_specs=pl.BlockSpec((None, C, TN), lambda b, j: (b, 0, j)),
        compiler_params=pltpu.CompilerParams(
            dimension_semantics=("parallel", "parallel"),
            vmem_limit_bytes=vmem_limit),
        cost_estimate=pl.CostEstimate(
            flops=int(2 * B * C * C * N),
            transcendentals=0,
            bytes_accessed=int(2 * B * C * N + 2 * B * C * C
                               + out_isize * B * C * N)),
    )(attn, x)

    return out.reshape(B, C, H, W)


def cam_reference(x_nchw, gamma):
    """Pure-JAX reference mirroring the PyTorch forward (true f32 matmuls)."""
    B, C, H, W = x_nchw.shape
    x = x_nchw.reshape(B, C, H * W).astype(jnp.float32)
    energy = jnp.einsum("bcn,bdn->bcd", x, x, precision=lax.Precision.HIGHEST)
    e_new = jnp.max(energy, axis=-1, keepdims=True) - energy
    attn = jax.nn.softmax(e_new, axis=-1)
    out = jnp.einsum("bcd,bdn->bcn", attn, x, precision=lax.Precision.HIGHEST)
    return (gamma * out + x).reshape(B, C, H, W)


def _check(x, gamma, **kw):
    out = jax.block_until_ready(cam_module(x, gamma, **kw))
    assert out.shape == x.shape
    out_f32 = out.astype(jnp.float32)

    # (a) Kernel-math check: reference evaluated on the same bf16-quantized
    #     activations the kernel consumes (isolates kernel error from the
    #     requested bf16 activation feed).
    x_q = x.astype(jnp.bfloat16).astype(jnp.float32)
    ref_q = cam_reference(x_q, gamma)
    err_q = float(jnp.max(jnp.abs(out_f32 - ref_q)))
    assert jnp.allclose(out_f32, ref_q, atol=2e-2, rtol=2e-2), f"max err {err_q}"

    # (b) End-to-end sanity vs the strict f32 reference (global relative error;
    #     elementwise deviations stem from bf16 input quantization entering a
    #     near-argmin softmax and are confined to near-tied rows).
    ref = cam_reference(x, gamma)
    rel = float(jnp.linalg.norm((out_f32 - ref).ravel())
                / jnp.linalg.norm(ref.ravel()))
    assert rel < 5e-2, f"relative error {rel}"


if __name__ == "__main__":
    key = jax.random.PRNGKey(0)
    k1, k2 = jax.random.split(key)
    # NOTE: PyTorch inits gamma = 0 (out == x); a nonzero gamma exercises the
    # attention path; the formula gamma*out + x is identical.
    gamma = jnp.float32(0.5)

    # Case 1: B=2, C=64, 16x16 -> single channel row-block (TC == C); cap the
    # spatial tile at 128 so the k-reduction (init/accumulate/finalize) runs
    # over two tiles.
    x1 = jax.random.normal(k1, (2, 64, 16, 16), dtype=jnp.float32)
    _check(x1, gamma, max_spatial_tile=128)

    # Case 2: C=128 with a forced 64-row channel block -> exercises the
    # row-tiled pass-1 path used at large C (v7x VMEM bound / 2-TC parallelism).
    x2 = jax.random.normal(k2, (1, 128, 16, 16), dtype=jnp.float32)
    _check(x2, gamma, max_row_block=64, max_spatial_tile=128)

    print("KERNEL_OK")
</pallas_src>

<mosaic_0001>
module attributes {stable_mosaic.version = 11 : i64} {
  func.func @kernel(%arg0: i32, %arg1: i32, %arg2: i32, %arg3: memref<1xf32, #tpu.memory_space<smem>>, %arg4: memref<1x64x128xbf16, #tpu.memory_space<vmem>>, %arg5: memref<1x64x64xbf16, #tpu.memory_space<vmem>>, %arg6: memref<64x64xf32, #tpu.memory_space<vmem>>) attributes {dimension_semantics = [#tpu.dimension_semantics<parallel>, #tpu.dimension_semantics<parallel>, #tpu.dimension_semantics<arbitrary>], iteration_bounds = array<i64: 2, 1, 2>, scalar_prefetch = 0 : i64, scratch_operands = 1 : i64, tpu.core_type = #tpu.core_type<tc>, window_params = [{transform_indices = @transform_0, window_bounds = array<i64: 1>}, {transform_indices = @transform_1, window_bounds = array<i64: 1, 64, 128>}, {transform_indices = @transform_2, window_bounds = array<i64: 1, 64, 64>}]} {
    %c0_i32 = arith.constant 0 : i32
    %0 = arith.cmpi eq, %arg2, %c0_i32 : i32
    %1 = arith.extui %0 : i1 to i32
    %c0_i32_0 = arith.constant 0 : i32
    %2 = arith.cmpi ne, %1, %c0_i32_0 : i32
    scf.if %2 {
      %cst_8 = arith.constant 0.000000e+00 : f32
      %12 = vector.broadcast %cst_8 : f32 to vector<64x64xf32>
      %c0_9 = arith.constant 0 : index
      %c0_10 = arith.constant 0 : index
      %13 = vector.load %arg6[%c0_9, %c0_10] : memref<64x64xf32, #tpu.memory_space<vmem>>, vector<64x64xf32>
      tpu.vector_store %arg6[%c0_9, %c0_10], %12 {strides = array<i32>} : memref<64x64xf32, #tpu.memory_space<vmem>>, vector<64x64xf32>,
    } else {
    }
    %c0 = arith.constant 0 : index
    %c0_1 = arith.constant 0 : index
    %c0_2 = arith.constant 0 : index
    %3 = vector.load %arg4[%c0, %c0_1, %c0_2] : memref<1x64x128xbf16, #tpu.memory_space<vmem>>, vector<1x64x128xbf16>
    %4 = vector.shape_cast %3 : vector<1x64x128xbf16> to vector<64x128xbf16>
    %c0_3 = arith.constant 0 : index
    %c0_4 = arith.constant 0 : index
    %5 = vector.load %arg6[%c0_3, %c0_4] : memref<64x64xf32, #tpu.memory_space<vmem>>, vector<64x64xf32>
    %cst = arith.constant dense<0.000000e+00> : vector<64x64xf32>
    %6 = tpu.matmul %4, %4, %cst {dimension_numbers = #tpu.dot_dimension_numbers<[1], [1], [0], [0], [0, 0, 1, 0], [], []>} : vector<64x128xbf16>, vector<64x128xbf16>, vector<64x64xf32> -> vector<64x64xf32>
    %7 = arith.addf %5, %6 : vector<64x64xf32>
    %c0_5 = arith.constant 0 : index
    %c0_6 = arith.constant 0 : index
    %8 = vector.load %arg6[%c0_5, %c0_6] : memref<64x64xf32, #tpu.memory_space<vmem>>, vector<64x64xf32>
    tpu.vector_store %arg6[%c0_5, %c0_6], %7 {strides = array<i32>} : memref<64x64xf32, #tpu.memory_space<vmem>>, vector<64x64xf32>,
    %c1_i32 = arith.constant 1 : i32
    %9 = arith.cmpi eq, %arg2, %c1_i32 : i32
    %10 = arith.extui %9 : i1 to i32
    %c0_i32_7 = arith.constant 0 : i32
    %11 = arith.cmpi ne, %10, %c0_i32_7 : i32
    scf.if %11 {
      %c0_8 = arith.constant 0 : index
      %c0_9 = arith.constant 0 : index
      %12 = vector.load %arg6[%c0_8, %c0_9] : memref<64x64xf32, #tpu.memory_space<vmem>>, vector<64x64xf32>
      %cst_10 = arith.constant dense<0x7F800000> : vector<64xf32>
      %13 = vector.multi_reduction <minimumf>, %12, %cst_10 [1] : vector<64x64xf32> to vector<64xf32>
      %14 = vector.shape_cast %13 : vector<64xf32> to vector<64x1xf32>
      %15 = vector.broadcast %14 : vector<64x1xf32> to vector<64x64xf32>
      %16 = arith.subf %15, %12 : vector<64x64xf32>
      %17 = math.exp %16 : vector<64x64xf32>
      %cst_11 = arith.constant dense<0.000000e+00> : vector<64xf32>
      %18 = vector.multi_reduction <add>, %17, %cst_11 [1] : vector<64x64xf32> to vector<64xf32>
      %19 = vector.shape_cast %18 : vector<64xf32> to vector<64x1xf32>
      %20 = tpu.reciprocal %19 : vector<64x1xf32> -> vector<64x1xf32>
      %c0_12 = arith.constant 0 : index
      %21 = memref.load %arg3[%c0_12] : memref<1xf32, #tpu.memory_space<smem>>
      %22 = vector.broadcast %21 : f32 to vector<64x1xf32>
      %23 = arith.mulf %22, %20 : vector<64x1xf32>
      %24 = vector.broadcast %23 : vector<64x1xf32> to vector<64x64xf32>
      %25 = arith.mulf %17, %24 : vector<64x64xf32>
      %26 = arith.truncf %25 : vector<64x64xf32> to vector<64x64xbf16>
      %c0_13 = arith.constant 0 : index
      %c0_14 = arith.constant 0 : index
      %c0_15 = arith.constant 0 : index
      %27 = vector.load %arg5[%c0_13, %c0_14, %c0_15] : memref<1x64x64xbf16, #tpu.memory_space<vmem>>, vector<1x64x64xbf16>
      %28 = vector.shape_cast %27 : vector<1x64x64xbf16> to vector<64x64xbf16>
      %29 = vector.shape_cast %26 : vector<64x64xbf16> to vector<1x64x64xbf16>
      tpu.vector_store %arg5[%c0_13, %c0_14, %c0_15], %29 {strides = array<i32>} : memref<1x64x64xbf16, #tpu.memory_space<vmem>>, vector<1x64x64xbf16>,
    } else {
    }
    return
  }
  func.func @transform_0(%arg0: i32, %arg1: i32, %arg2: i32) -> i32 {
    %c0_i32 = arith.constant 0 : i32
    %c0_i32_0 = arith.constant 0 : i32
    return %c0_i32 : i32
  }
  func.func @transform_1(%arg0: i32, %arg1: i32, %arg2: i32) -> (i32, i32, i32) {
    %c0_i32 = arith.constant 0 : i32
    %c0_i32_0 = arith.constant 0 : i32
    return %arg0, %c0_i32, %arg2 : i32, i32, i32
  }
  func.func @transform_2(%arg0: i32, %arg1: i32, %arg2: i32) -> (i32, i32, i32) {
    %c0_i32 = arith.constant 0 : i32
    %c0_i32_0 = arith.constant 0 : i32
    return %arg0, %arg1, %c0_i32 : i32, i32, i32
  }
}

</mosaic_0001>

<bundles_post_ra>
// kernel: tpu_custom_call.1
= control target key start
LH: loop header
LB: loop body
LE: loop exit
PB: predicated region body
PF: predicated region fallthrough
CT: control target
= control target key end

     0   :  { %s1213_s0 = inlined_call_operand.<no memory space> [shape: f32[1], index: 0, kind: input, shape index: {}]   ;;  %s1214_s1 = inlined_call_operand.hbm [shape: bf16[2,64,256], index: 1, kind: input, shape index: {}]   ;;  %s1215_s2 = inlined_call_operand.hbm [shape: bf16[2,64,64], index: 2, kind: output, shape index: {}]  }
   0x1   :  { %7 = sst [smem:[#allocation3]] %s1213_s0 }
   0x2   :  { %8 = vsyncpa [#allocation5], 0 }
   0x3   :  { %10 = vsyncpa [#allocation5 + $0x1], 0 }
   0x4   :  { %11 = vsyncpa [#allocation6], 0 }
   0x5   :  { %13 = vsyncpa [#allocation6 + $0x1], 0  ;;  %s973_s11 = smov 0   ;;  %s975_s12 = smov 0  }
   0x6   :  { %s977_s13 = smov 0   ;;  %s979_s14 = smov 0  }
   0x7   :  { %s981_s15 = smov 0   ;;  %s983_s16 = smov 0  }
   0x8   :  { %s985_s17 = smov 0   ;;  %s987_s18 = smov 0  }
   0x9   :  { %s989_s0 = smov 0   ;;  %s991_s19 = smov 0  }
   0xa   :  { %s993_s20 = smov 0  }
   0xb LB: > { %s583_s21 = sadd.s32 4294967295, %s945_s20   ;;  %s584_s22 = sadd.s32 4294967294, %s945_s20   ;;  %s945_s20 = sphi %s993_s20, %s19_s20   ;;  %s941_s19 = sphi %s991_s19, %s1236_s19   ;;  %s937_s0 = sphi %s989_s0, %s1235_s0   ;;  %s933_s18 = sphi %s987_s18, %s1234_s18   ;;  %s929_s17 = sphi %s985_s17, %s1233_s17   ;;  %s925_s16 = sphi %s983_s16, %s1232_s16   ;;  %s921_s15 = sphi %s981_s15, %s1231_s15   ;;  %s917_s14 = sphi %s979_s14, %s1230_s14   ;;  %s913_s13 = sphi %s977_s13, %s1229_s13   ;;  %s909_s12 = sphi %s975_s12, %s1228_s12   ;;  %s905_s11 = sphi %s973_s11, %s1227_s11  }
   0xc   : > { %s31_s23 = sadd.s32 1, %s937_s0  ;;  %s38_s24 = sadd.s32 1, %s941_s19 }
   0xd   : > { %p32_p0 = scmp.ge.s32.totalorder %s31_s23, 2  ;;  %s68_s25 = sadd.s32 1, %s925_s16 }
   0xe   : > { %p75_p1 = scmp.ne.s32.totalorder %s925_s16, %s921_s15  ;;  %p76_p2 = scmp.eq.s32.totalorder %s945_s20, 0 }
   0xf   : > { %s1238_s23 = smov (%p32_p0, %s31_s23), 0  ;;  %s1240_s24 = smov (!%p32_p0, %s38_s24), %s941_s19 }
  0x10   : > { %1218 = sst [smem:[#allocation10_spill]] %s1238_s23  ;;  %s64_s26 = ssub.s32 %s937_s0, %s1238_s23 }
  0x11   : > { %p1039_p3 = por %p76_p2, %p75_p1  ;;  %p40_p4 = scmp.ge.s32.totalorder %s1240_s24, 2 }
  0x12   : > { %p81_p5 = scmp.ne.s32.totalorder %s921_s15, %s917_s14  ;;  %p82_p6 = scmp.eq.s32.totalorder %s583_s21, 0 }
  0x13   : > { %s96_s28 = sadd.s32 1, %s913_s13  ;;  %s1242_s24 = smov (%p40_p4, %s1240_s24), 0 }
  0x14   : > { %1220 = sst [smem:[#allocation11_spill]] %s1242_s24  ;;  %p1047_p7 = por %p82_p6, %p81_p5 }
  0x15   : > { %p106_p8 = scmp.ne.s32.totalorder %s913_s13, %s909_s12  ;;  %s63_s30 = ssub.s32 %s941_s19, %s1242_s24 }
  0x16   : > { %p107_p9 = scmp.eq.s32.totalorder %s583_s21, 3  ;;  %s65_s3 = sor.u32 %s64_s26, %s63_s30 }
  0x17   : > { %p94_p10 = scmp.eq.s32.totalorder %s63_s30, 0  ;;  %p66_p11 = scmp.eq.s32.totalorder %s65_s3, 0 }
  0x18   : > { %p1055_p12 = por %p107_p9, %p106_p8  ;;  %p112_p13 = scmp.ne.s32.totalorder %s909_s12, %s905_s11 }
  0x19   : > { %s1060_s5 = scalar_select %p94_p10, %s913_s13, %s96_s28  }
  0x1a   : > { %s1063_s6 = scalar_select %p66_p11, %s925_s16, %s68_s25  }
  0x1b   : > { %p113_p0 = scmp.eq.s32.totalorder %s584_s22, 3  ;;  %p665_p1 = scmp.lt.s32.totalorder %s945_s20, 4 }
  0x1c   : > { %s136_s8 = sand.u32 1, %s925_s16   ;;  %s588_s10 = sshll.u32 %s941_s19, 4 }
  0x1d   : > { %p1068_p2 = por %p113_p0, %p112_p13  ;;  %s587_s9 = sshll.u32 %s136_s8, 5 }
  0x1e   : > { %s145_s14 = sadd.s32 %s937_s0, %s588_s10  ;;  %s140_s21 = scalar_lea.vmem [#allocation4], %s587_s9 }
  0x1f   : > { %s148_s26 = sshll.u32 %s140_s21, 4  ;;  %s589_s30 = sshll.u32 %s145_s14, 6  ;;  %s149_s26 = int_to_ptr.vmem [resolvable:$true] %s148_s26 }
  0x20   : > { %s147_s25 = scalar_lea.hbm %s1214_s1, %s589_s30  ;;  %p1080_p4 = pnand %p665_p1, %p1039_p3 }
  0x21   : > { %s137_s24 = scalar_lea.sflag [#allocation5], %s136_s8  ;;  %s810_s23 = scalar_lea.vmem %s149_s26, 512 }
  0x22   : > { %p799_p5 = pneg %p1080_p4  ;;  %p811_p6 = scmp.ne.s32.totalorder %s149_s26, %s810_s23 }
  0x23   : > { %s947_s9 = smov [#allocation4]  }
  0x24   : > { %p813_p8 = pnand %p811_p6, %p799_p5  ;;  %s815_s10 = sshll.u32 %s947_s9, 4  ;;  %s816_s10 = int_to_ptr.vmem [resolvable:$false] %s815_s10 }
  0x25   : > { %s817_s14 = scalar_lea.vmem %s816_s10, 1024  ;;  %p818_p10 = scmp.lt.s32.totalorder %s149_s26, %s816_s10 }
  0x26   : > { %p814_p9 = pneg %p813_p8  ;;  %p819_p11 = scmp.lt.s32.totalorder %s817_s14, %s810_s23 }
  0x28   : > { %p820_p13 = por %p819_p11, %p818_p10 }
  0x2a   : > { %p821_p0 = pnand %p820_p13, %p814_p9 }
  0x2c   : > { %824 = shalt.err (!%p821_p0)
}
  0x2d   : > { %s948_s27 = smov 128   ;;  %s949_s8 = smov 64  }
  0x2e   : > { %s950_s21 = smov 4   ;;  %p590_p3 = scmp.ge.s32.totalorder %s945_s20, 1 }
  0x2f   : > { %660 = dma.hbm_to_vmem [thread:$0]  (!%p1080_p4), %s147_s25, 512, %s149_s26, %s137_s24, %s948_s27, %s949_s8, %s950_s21  }
  0x30   : > { %p156_p1 = scmp.lt.s32.totalorder %s945_s20, 5 }
  0x32   : > { %p157_p5 = pnand %p590_p3, %p156_p1 }
  0x33   : > { %s162_s30 = sand.u32 (!%p157_p5), 1, %s921_s15  }
  0x34   : > { %160 = sbr.rel (%p157_p5) target bundleno = 665 (0x299), region = 28  ;;  %s591_s3 = sshll.u32 (!%p157_p5), %s162_s30, 5 }
  0x35   : > { %s163_s23 = scalar_lea.sflag (!%p157_p5), [#allocation5], %s162_s30  ;;  %s166_s28 = scalar_lea.vmem (!%p157_p5), [#allocation4], %s591_s3 }
  0x39   : > { %896 = dma.done.wait (%p1047_p7), %s163_s23, 512  }
  0x3a   : > { %898 = vsyncadd (%p1047_p7), %s163_s23, 4294966784  ;;  %s184_s9 = sand.u32 1, %s909_s12   ;;  %p593_p4 = scmp.ne.s32.totalorder %s929_s17, 0 }
  0x3b   : > { %s592_s24 = sshll.u32 %s184_s9, 5 }
  0x3c   : > { %s1098_s26 = scalar_lea.vmem [#allocation7], %s592_s24  ;;  %192 = sbr.rel (%p593_p4) target bundleno = 70 (0x46), region = 36 }
  0x41   : > { %vm193_vm0 = vcmask 523264   ;;  %v951_v0 = vmov 0.0  }
  0x42   : > { %194 = vst.msk [vmem:[#allocation2] sm:$0xff] %vm193_vm0, %v951_v0  ;;  %195 = vst.msk [vmem:[#allocation2 + $0x8] sm:$0xff] %vm193_vm0, %v951_v0 }
  0x43   : > { %196 = vst.msk [vmem:[#allocation2 + $0x10] sm:$0xff] %vm193_vm0, %v951_v0  ;;  %197 = vst.msk [vmem:[#allocation2 + $0x18] sm:$0xff] %vm193_vm0, %v951_v0 }
  0x44   : > { %198 = vst.msk [vmem:[#allocation2 + $0x20] sm:$0xff] %vm193_vm0, %v951_v0  ;;  %199 = vst.msk [vmem:[#allocation2 + $0x28] sm:$0xff] %vm193_vm0, %v951_v0 }
  0x45   : > { %200 = vst.msk [vmem:[#allocation2 + $0x30] sm:$0xff] %vm193_vm0, %v951_v0  ;;  %201 = vst.msk [vmem:[#allocation2 + $0x38] sm:$0xff] %vm193_vm0, %v951_v0 }
  0x46 PF: > { %v761_v1 = vld [vmem:[%s166_s28 + $0x18] sm:$0xff]   ;;  %v762_v2 = vld [vmem:[%s166_s28 + $0x10] sm:$0xff]   ;;  %v764_v3 = vld [vmem:[%s166_s28] sm:$0xff]   ;;  %vm315_vm1 = vcmask 523264   ;;  %p598_p7 = scmp.ne.s32.totalorder %s929_s17, 1 }
  0x47   : > { %629 = vmatprep.subr.bf16.mxu0 %v761_v1  ;;  %645 = vmatprep.subr.bf16.mxu1 %v761_v1  ;;  %v763_v4 = vld [vmem:[%s166_s28 + $0x8] sm:$0xff]   ;;  %s416_s17 = sld [smem:[#allocation3]] (!%p598_p7) }
  0x48   : > { %630 = vmatpush3.bf16.xpose.msra.mxu0 %v761_v1  ;;  %649 = vmatpush3.bf16.xpose.msra.mxu1 %v761_v1 }
  0x49   : > { %631 = vmatprep.subr.bf16.mxu0 %v762_v2  ;;  %646 = vmatprep.subr.bf16.mxu1 %v762_v2  ;;  %v210_v9 = vld [vmem:[#allocation2] sm:$0xff]  ;;  %v211_v21 = vld [vmem:[#allocation2 + $0x8] sm:$0xff] }
  0x4a   : > { %637 = vmatprep.mubr.bf16.mxu0 %v764_v3  ;;  %641 = vmatprep.mubr.bf16.mxu1 %v762_v2  ;;  %v212_v5 = vld [vmem:[#allocation2 + $0x10] sm:$0xff]  ;;  %v213_v15 = vld [vmem:[#allocation2 + $0x18] sm:$0xff] }
  0x4b   : > { %v214_v10 = vld [vmem:[#allocation2 + $0x20] sm:$0xff]  ;;  %v215_v22 = vld [vmem:[#allocation2 + $0x28] sm:$0xff] }
  0x4c   : > { %v216_v6 = vld [vmem:[#allocation2 + $0x30] sm:$0xff]  ;;  %v217_v16 = vld [vmem:[#allocation2 + $0x38] sm:$0xff] }
  0x50   : > { %632 = vmatpush3.bf16.xpose.msra.mxu0 %v762_v2  ;;  %650 = vmatpush3.bf16.xpose.msra.mxu1 %v762_v2 }
  0x51   : > { %633 = vmatprep.subr.bf16.mxu0 %v763_v4  ;;  %647 = vmatprep.subr.bf16.mxu1 %v763_v4 }
  0x58   : > { %634 = vmatpush3.bf16.xpose.msra.mxu0 %v763_v4  ;;  %651 = vmatpush3.bf16.xpose.msra.mxu1 %v763_v4 }
  0x59   : > { %635 = vmatprep.subr.bf16.mxu0 %v764_v3  ;;  %648 = vmatprep.subr.bf16.mxu1 %v764_v3 }
  0x60   : > { %636 = vmatpush3.bf16.xpose.msra.mxu0 %v764_v3  ;;  %652 = vmatpush3.bf16.xpose.msra.mxu1 %v764_v3 }
  0x67   : > { %638 = vmatmul.mubr.bf16.vlgmr.msra.gmra.mxu0 %v763_v4  ;;  %642 = vmatmul.mubr.bf16.vlgmr.msra.gmra.mxu1 %v761_v1 }
 0x127   : > { %v639_v7 = vpop.f32.mrf.mxu0  ;;  %v643_v8 = vpop.f32.mrf.mxu1 }
 0x128   : > { %v309_v11 = vadd.f32 %v639_v7, %v212_v5  ;;  %v313_v12 = vadd.f32 %v643_v8, %v216_v6 }
 0x129   : > { %v276_v13 = vpop.f32.mrf.mxu0  ;;  %v292_v14 = vpop.f32.mrf.mxu1 }
 0x12a   : > { %318 = vst.msk [vmem:[#allocation2 + $0x10] sm:$0xff] %vm315_vm1, %v309_v11  ;;  %322 = vst.msk [vmem:[#allocation2 + $0x30] sm:$0xff] %vm315_vm1, %v313_v12  ;;  %v307_v17 = vadd.f32 %v276_v13, %v210_v9  ;;  %v311_v18 = vadd.f32 %v292_v14, %v214_v10 }
 0x12b   : > { %v640_v19 = vpop.f32.mrf.mxu0  ;;  %v644_v20 = vpop.f32.mrf.mxu1 }
 0x12c   : > { %316 = vst.msk [vmem:[#allocation2] sm:$0xff] %vm315_vm1, %v307_v17  ;;  %320 = vst.msk [vmem:[#allocation2 + $0x20] sm:$0xff] %vm315_vm1, %v311_v18  ;;  %v310_v23 = vadd.f32 %v640_v19, %v213_v15  ;;  %v314_v24 = vadd.f32 %v644_v20, %v217_v16  ;;  %327 = sbr.rel (%p598_p7) target bundleno = 641 (0x281), region = 40 }
 0x12d   : > { %v279_v25 = vpop.f32.mrf.mxu0  ;;  %v295_v26 = vpop.f32.mrf.mxu1 }
 0x12e   : > { %319 = vst.msk [vmem:[#allocation2 + $0x18] sm:$0xff] %vm315_vm1, %v310_v23  ;;  %323 = vst.msk [vmem:[#allocation2 + $0x38] sm:$0xff] %vm315_vm1, %v314_v24  ;;  %v308_v27 = vadd.f32 %v279_v25, %v211_v21  ;;  %v312_v28 = vadd.f32 %v295_v26, %v215_v22 }
 0x130   : > { %317 = vst.msk [vmem:[#allocation2 + $0x8] sm:$0xff] %vm315_vm1, %v308_v27  ;;  %321 = vst.msk [vmem:[#allocation2 + $0x28] sm:$0xff] %vm315_vm1, %v312_v28 }
 0x131   : > { %v330_v30 = vld [vmem:[#allocation2 + $0x10] sm:$0xff]  ;;  %v417_v26 = vstv %s416_s17  ;;  %vm466_vm2 = vcmask 519168  }
 0x132   : > { %v342_v33 = vsel %vm315_vm1, %v330_v30, inf  ;;  %v334_v41 = vld [vmem:[#allocation2 + $0x30] sm:$0xff] }
 0x133   : > { %v328_v29 = vld [vmem:[#allocation2] sm:$0xff]  ;;  %343 = vmin.xlane.f32.xlu1 %v342_v33  ;;  %v354_v43 = vsel %vm315_vm1, %v334_v41, inf }
 0x134   : > { %v336_v32 = vsel %vm315_vm1, %v328_v29, inf  ;;  %v332_v37 = vld [vmem:[#allocation2 + $0x20] sm:$0xff] }
 0x135   : > { %v331_v34 = vld [vmem:[#allocation2 + $0x18] sm:$0xff]  ;;  %337 = vmin.xlane.f32.xlu0 %v336_v32  ;;  %v348_v39 = vsel %vm315_vm1, %v332_v37, inf }
 0x136   : > { %v345_v36 = vsel %vm315_vm1, %v331_v34, inf  ;;  %v335_v42 = vld [vmem:[#allocation2 + $0x38] sm:$0xff] }
 0x137   : > { %v329_v31 = vld [vmem:[#allocation2 + $0x8] sm:$0xff]  ;;  %346 = vmin.xlane.f32.xlu1 %v345_v36  ;;  %v357_v44 = vsel %vm315_vm1, %v335_v42, inf }
 0x138   : > { %v339_v35 = vsel %vm315_vm1, %v329_v31, inf  ;;  %v333_v38 = vld [vmem:[#allocation2 + $0x28] sm:$0xff] }
 0x139   : > { %340 = vmin.xlane.f32.xlu0 %v339_v35  ;;  %v351_v40 = vsel %vm315_vm1, %v333_v38, inf }
 0x13b   : > { %352 = vmin.xlane.f32.xlu1 %v351_v40 }
 0x13d   : > { %349 = vmin.xlane.f32.xlu0 %v348_v39 }
 0x13f   : > { %358 = vmin.xlane.f32.xlu1 %v357_v44 }
 0x141   : > { %355 = vmin.xlane.f32.xlu0 %v354_v43 }
 0x1bc   : > { %v344_v46 = vpop.xlane.xlu1 %343 }
 0x1bd   : > { %v362_v48 = vsub.f32 %v344_v46, %v330_v30 }
 0x1be   : > { %v338_v45 = vpop.xlane.xlu0 %337 }
 0x1bf   : > { %v360_v47 = vsub.f32 %v338_v45, %v328_v29  ;;  %v372_v50 = vmul.f32 1.442695, %v362_v48 }
 0x1c0   : > { %v347_v52 = vpop.xlane.xlu1 %346 }
 0x1c1   : > { %v368_v49 = vmul.f32 1.442695, %v360_v47  ;;  %v363_v54 = vsub.f32 %v347_v52, %v331_v34 }
 0x1c2   : > { %v341_v51 = vpop.xlane.xlu0 %340 }
 0x1c3   : > { %765 = vpow2.f32 %v368_v49  ;;  %v361_v53 = vsub.f32 %v341_v51, %v329_v31  ;;  %v374_v56 = vmul.f32 1.442695, %v363_v54 }
 0x1c4   : > { %767 = vpow2.f32 %v372_v50  ;;  %v353_v58 = vpop.xlane.xlu1 %352 }
 0x1c5   : > { %v370_v55 = vmul.f32 1.442695, %v361_v53  ;;  %v365_v60 = vsub.f32 %v353_v58, %v333_v38 }
 0x1c6   : > { %v350_v57 = vpop.xlane.xlu0 %349 }
 0x1c7   : > { %769 = vpow2.f32 %v370_v55  ;;  %v364_v59 = vsub.f32 %v350_v57, %v332_v37  ;;  %v378_v62 = vmul.f32 1.442695, %v365_v60 }
 0x1c8   : > { %771 = vpow2.f32 %v374_v56  ;;  %v359_v0 = vpop.xlane.xlu1 %358 }
 0x1c9   : > { %v376_v61 = vmul.f32 1.442695, %v364_v59  ;;  %v367_v2 = vsub.f32 %v359_v0, %v335_v42 }
 0x1ca   : > { %v356_v63 = vpop.xlane.xlu0 %355 }
 0x1cb   : > { %773 = vpow2.f32 %v376_v61  ;;  %v366_v1 = vsub.f32 %v356_v63, %v334_v41  ;;  %v382_v4 = vmul.f32 1.442695, %v367_v2 }
 0x1cc   : > { %775 = vpow2.f32 %v378_v62 }
 0x1cd   : > { %v380_v3 = vmul.f32 1.442695, %v366_v1 }
 0x1cf   : > { %777 = vpow2.f32 %v380_v3 }
 0x1d0   : > { %v766_v5 = vpop.eup %765  ;;  %779 = vpow2.f32 %v382_v4 }
 0x1d1   : > { %v768_v6 = vpop.eup %767  ;;  %v384_v7 = vsel %vm315_vm1, %v766_v5, 0.0 }
 0x1d2   : > { %385 = vadd.xlane.f32.xlu0 %v384_v7  ;;  %v390_v8 = vsel %vm315_vm1, %v768_v6, 0.0 }
 0x1d4   : > { %v770_v9 = vpop.eup %769 }
 0x1d5   : > { %v772_v10 = vpop.eup %771  ;;  %v387_v11 = vsel %vm315_vm1, %v770_v9, 0.0 }
 0x1d6   : > { %391 = vadd.xlane.f32.xlu0 %v390_v8  ;;  %388 = vadd.xlane.f32.xlu1 %v387_v11  ;;  %v393_v12 = vsel %vm315_vm1, %v772_v10, 0.0 }
 0x1d8   : > { %v774_v13 = vpop.eup %773 }
 0x1d9   : > { %v776_v14 = vpop.eup %775  ;;  %v396_v15 = vsel %vm315_vm1, %v774_v13, 0.0 }
 0x1da   : > { %394 = vadd.xlane.f32.xlu1 %v393_v12  ;;  %397 = vadd.xlane.f32.xlu0 %v396_v15  ;;  %v399_v16 = vsel %vm315_vm1, %v776_v14, 0.0 }
 0x1dc   : > { %v778_v17 = vpop.eup %777 }
 0x1dd   : > { %v780_v18 = vpop.eup %779  ;;  %v402_v19 = vsel %vm315_vm1, %v778_v17, 0.0 }
 0x1de   : > { %400 = vadd.xlane.f32.xlu1 %v399_v16  ;;  %403 = vadd.xlane.f32.xlu0 %v402_v19  ;;  %v405_v20 = vsel %vm315_vm1, %v780_v18, 0.0 }
 0x1e2   : > { %406 = vadd.xlane.f32.xlu1 %v405_v20 }
 0x25b   : > { %v386_v21 = vpop.xlane.xlu0 %385 }
 0x25c   : > { %781 = vrcp.f32 %v386_v21 }
 0x25f   : > { %v389_v22 = vpop.xlane.xlu1 %388  ;;  %v392_v23 = vpop.xlane.xlu0 %391 }
 0x260   : > { %783 = vrcp.f32 %v389_v22 }
 0x261   : > { %785 = vrcp.f32 %v392_v23 }
 0x263   : > { %v395_v24 = vpop.xlane.xlu1 %394  ;;  %v398_v25 = vpop.xlane.xlu0 %397 }
 0x264   : > { %787 = vrcp.f32 %v395_v24 }
 0x265   : > { %789 = vrcp.f32 %v398_v25 }
 0x267   : > { %v401_v27 = vpop.xlane.xlu1 %400  ;;  %v404_v28 = vpop.xlane.xlu0 %403 }
 0x268   : > { %791 = vrcp.f32 %v401_v27 }
 0x269   : > { %v782_v29 = vpop.eup %781  ;;  %793 = vrcp.f32 %v404_v28 }
 0x26a   : > { %v418_v30 = vmul.f32 %v782_v29, %v417_v26 }
 0x26b   : > { %v407_v31 = vpop.xlane.xlu1 %406 }
 0x26c   : > { %v426_v32 = vmul.f32 %v766_v5, %v418_v30  ;;  %795 = vrcp.f32 %v407_v31 }
 0x26d   : > { %v784_v33 = vpop.eup %783 }
 0x26e   : > { %v786_v34 = vpop.eup %785  ;;  %v612_v35 = vpack.c.bf16 %v426_v32, %v426_v32  ;;  %v419_v36 = vmul.f32 %v784_v33, %v417_v26 }
 0x26f   : > { %v420_v37 = vmul.f32 %v786_v34, %v417_v26 }
 0x270   : > { %467 = vst.msk [vmem:[%s1098_s26] sm:$0xf] %vm466_vm2, %v612_v35  ;;  %v427_v38 = vmul.f32 %v770_v9, %v419_v36 }
 0x271   : > { %v788_v39 = vpop.eup %787  ;;  %v428_v40 = vmul.f32 %v768_v6, %v420_v37 }
 0x272   : > { %v790_v41 = vpop.eup %789  ;;  %v613_v42 = vpack.c.bf16 %v427_v38, %v427_v38  ;;  %v421_v43 = vmul.f32 %v788_v39, %v417_v26 }
 0x273   : > { %v614_v44 = vpack.c.bf16 %v428_v40, %v428_v40  ;;  %v422_v45 = vmul.f32 %v790_v41, %v417_v26 }
 0x274   : > { %468 = vst.msk [vmem:[%s1098_s26 + $0x4] sm:$0xf] %vm466_vm2, %v613_v42  ;;  %v429_v46 = vmul.f32 %v772_v10, %v421_v43 }
 0x275   : > { %v792_v47 = vpop.eup %791  ;;  %469 = vst.msk [vmem:[%s1098_s26 + $0x8] sm:$0xf] %vm466_vm2, %v614_v44  ;;  %v430_v48 = vmul.f32 %v774_v13, %v422_v45 }
 0x276   : > { %v794_v49 = vpop.eup %793  ;;  %v615_v50 = vpack.c.bf16 %v429_v46, %v429_v46  ;;  %v423_v51 = vmul.f32 %v792_v47, %v417_v26 }
 0x277   : > { %v616_v52 = vpack.c.bf16 %v430_v48, %v430_v48  ;;  %v424_v53 = vmul.f32 %v794_v49, %v417_v26 }
 0x278   : > { %470 = vst.msk [vmem:[%s1098_s26 + $0xc] sm:$0xf] %vm466_vm2, %v615_v50  ;;  %v431_v54 = vmul.f32 %v776_v14, %v423_v51 }
 0x279   : > { %v796_v55 = vpop.eup %795  ;;  %471 = vst.msk [vmem:[%s1098_s26 + $0x10] sm:$0xf] %vm466_vm2, %v616_v52  ;;  %v432_v56 = vmul.f32 %v778_v17, %v424_v53 }
 0x27a   : > { %v617_v57 = vpack.c.bf16 %v431_v54, %v431_v54  ;;  %v425_v58 = vmul.f32 %v796_v55, %v417_v26 }
 0x27b   : > { %v618_v59 = vpack.c.bf16 %v432_v56, %v432_v56 }
 0x27c   : > { %472 = vst.msk [vmem:[%s1098_s26 + $0x14] sm:$0xf] %vm466_vm2, %v617_v57  ;;  %v433_v60 = vmul.f32 %v780_v18, %v425_v58 }
 0x27d   : > { %473 = vst.msk [vmem:[%s1098_s26 + $0x18] sm:$0xf] %vm466_vm2, %v618_v59 }
 0x27e   : > { %v619_v61 = vpack.c.bf16 %v433_v60, %v433_v60 }
 0x280   : > { %474 = vst.msk [vmem:[%s1098_s26 + $0x1c] sm:$0xf] %vm466_vm2, %v619_v61 }
 0x281 PF: > { %s620_s29 = sshll.u32 %s933_s18, 9  ;;  %s491_s14 = sshll.u32 %s1098_s26, 4  ;;  %s1149_s14 = int_to_ptr.vmem [resolvable:$true] %s491_s14 }
 0x282   : > { %s1146_s10 = scalar_lea.hbm %s1215_s2, %s620_s29  ;;  %s1153_s27 = scalar_lea.sflag [#allocation6], %s184_s9 }
 0x283   : > { %s825_s8 = scalar_lea.vmem %s1149_s14, 512  ;;  %s952_s18 = smov [#allocation7]  }
 0x284   : > { %p826_p6 = scmp.ne.s32.totalorder %s1149_s14, %s825_s8  ;;  %s829_s21 = sshll.u32 %s952_s18, 4  ;;  %s830_s21 = int_to_ptr.vmem [resolvable:$false] %s829_s21 }
 0x285   : > { %s831_s30 = scalar_lea.vmem %s830_s21, 1024  ;;  %p832_p10 = scmp.lt.s32.totalorder %s1149_s14, %s830_s21 }
 0x286   : > { %p827_p8 = pnand %p826_p6, %p1055_p12  ;;  %p833_p11 = scmp.lt.s32.totalorder %s831_s30, %s825_s8 }
 0x288   : > { %p828_p9 = pneg %p827_p8  ;;  %p834_p13 = por %p833_p11, %p832_p10 }
 0x28a   : > { %p835_p0 = pnand %p834_p13, %p828_p9 }
 0x28c   : > { %838 = shalt.err (!%p835_p0)
}
 0x28d   : > { %s839_s3 = scalar_lea.hbm %s1146_s10, 512  ;;  %s843_s9 = scalar_lea.hbm %s1215_s2, 1024 }
 0x28e   : > { %p840_p3 = scmp.ne.s32.totalorder %s1146_s10, %s839_s3  ;;  %p844_p4 = scmp.lt.s32.totalorder %s1146_s10, %s1215_s2 }
 0x28f   : > { %p845_p7 = scmp.lt.s32.totalorder %s843_s9, %s839_s3 }
 0x290   : > { %p841_p1 = pnand %p840_p3, %p1055_p12 }
 0x291   : > { %p846_p6 = por %p845_p7, %p844_p4 }
 0x292   : > { %p842_p5 = pneg %p841_p1 }
 0x294   : > { %p847_p8 = pnand %p846_p6, %p842_p5 }
 0x296   : > { %850 = shalt.err (!%p847_p8)
}
 0x297   : > { %s953_s17 = smov 64   ;;  %s954_s29 = smov 4  }
 0x298   : > { %655 = dma.vmem_to_hbm [thread:$0]  (%p1055_p12), %s1149_s14, 512, %s1146_s10, %s1153_s27, %s953_s17, %s953_s17, %s954_s29  }
 0x299 PF: > { %p666_p9 = scmp.ge.s32.totalorder %s945_s20, 2  ;;  %s506_s25 = sand.u32 1, %s905_s11  }
 0x29a   : > { %s507_s22 = scalar_lea.sflag [#allocation6], %s506_s25 }
 0x29b   : > { %p662_p10 = pnand %p666_p9, %p1068_p2 }
 0x29d   : > { %p663_p11 = pneg %p662_p10 }
 0x29f   : > { %900 = dma.done.wait (%p663_p11), %s507_s22, 512  }
 0x2a0   : > { %902 = vsyncadd (%p663_p11), %s507_s22, 4294966784  ;;  %s19_s20 = sadd.s32 1, %s945_s20   ;;  %s1225_s4 = sld [smem:[#allocation10_spill]] }
 0x2a1   : > { %p16_p13 = scmp.ge.s32.totalorder %s19_s20, 6   ;;  %s1226_s10 = sld [smem:[#allocation11_spill]] }
 0x2a2   : > { %s1227_s11 = smov %s909_s12  ;;  %s1228_s12 = smov %s913_s13 }
 0x2a3   : > { %s1229_s13 = smov %s1060_s5  ;;  %s1230_s14 = smov %s921_s15 }
 0x2a4   : > { %s1231_s15 = smov %s925_s16  ;;  %s1232_s16 = smov %s1063_s6 }
 0x2a5   : > { %s1233_s17 = smov %s937_s0  ;;  %s1234_s18 = smov %s941_s19 }
 0x2a6   : > { %s1235_s0 = smov %s1225_s4  ;;  %18 = sbr.rel (!%p16_p13) target bundleno = 11 (0xb), region = 81 }
 0x2a7   : > { %s1236_s19 = smov %s1226_s10 }
 0x2ab   :  { %512 = vsyncpa [#allocation5], 1 }
 0x2ac   :  { %514 = vsyncpa [#allocation5 + $0x1], 1 }
 0x2ad   :  { %515 = vsyncpa [#allocation6], 1 }
 0x2ae   :  { %517 = vsyncpa [#allocation6 + $0x1], 1 }

</bundles_post_ra>
